<compile_context>
chip_gen: v6e
topology: v6e:2x2x1
jax: 0.10.0
libtpu: 0.0.40
codegen_flags: <defaults>
</compile_context>

<pallas_src>
import functools

import numpy as np
import jax
import jax.numpy as jnp
from jax.experimental import pallas as pl
from jax.experimental.pallas import tpu as pltpu

K = 3               # hparams.kernal_size
LEAKY_SLOPE = 0.01  # torch.nn.LeakyReLU default
BN_EPS = 1e-5       # torch.nn.BatchNorm2d default


def _tower_kernel(mask_ref, x_ref, w_ref, gamma_ref, beta_ref, o_ref, *, w):
    """One residual Block per grid step; activations stay resident in o_ref.

    mask_ref : (K*K, N*H*W)  {0,1} zero-pad validity, one row per 3x3 tap
    x_ref    : (C, N*H*W)    C-major input slab (only consumed at layer 0)
    w_ref    : (K*K, C, C)   this layer's conv2 weight, [tap, cout, cin]
    gamma_ref: (C, 1)        this layer's BatchNorm2d weight
    beta_ref : (C, 1)        this layer's BatchNorm2d bias
    o_ref    : (C, N*H*W)    activation carrier, resident across the grid
    """
    C, NHW = x_ref.shape
    layer = pl.program_id(0)

    @pl.when(layer == 0)
    def _():
        o_ref[...] = x_ref[...]

    xv = o_ref[...]            # conv source + residual for this layer
    mask = mask_ref[...]       # (K*K, NHW)

    # 3x3 conv with implicit ZeroPad2d(1): each tap is a lane rotation of the
    # resident activation slab, masked to zero off-board, fed straight to the
    # MXU and accumulated in f32 (no im2col scratch).
    acc = jnp.zeros((C, NHW), jnp.float32)
    for kh in range(K):
        for kw in range(K):
            dh, dw = kh - 1, kw - 1
            s = dh * w + dw                                  # source lane offset
            shifted = xv if s == 0 else pltpu.roll(xv, shift=(-s) % NHW, axis=1)
            tap = kh * K + kw
            tapped = shifted * mask[tap:tap + 1, :]          # zero-pad mask
            acc = acc + jnp.dot(w_ref[tap], tapped,
                                preferred_element_type=jnp.float32)
    # conv2 bias omitted: cancelled exactly by the training-mode BN mean
    # subtraction below.  Re-add it if BN ever uses running (eval) stats.

    # BatchNorm2d (training mode): biased batch stats, centered variance.
    inv_nhw = 1.0 / NHW
    mean = jnp.sum(acc, axis=1, keepdims=True) * inv_nhw              # (C, 1)
    centered = acc - mean
    var = jnp.sum(centered * centered, axis=1, keepdims=True) * inv_nhw
    scale = gamma_ref[...] * jax.lax.rsqrt(var + BN_EPS)              # (C, 1)

    y = centered * scale + beta_ref[...] + xv                         # BN + residual
    o_ref[...] = jnp.where(y >= 0, y, LEAKY_SLOPE * y)                # LeakyReLU


def _pad_masks(n, h, w):
    """{0,1} validity masks (K*K, N*H*W) implementing ZeroPad2d(1) per tap."""
    col = np.arange(n * h * w)
    hw = col % (h * w)
    hi, wi = hw // w, hw % w
    rows = []
    for kh in range(K):
        for kw in range(K):
            dh, dw = kh - 1, kw - 1
            rows.append((hi + dh >= 0) & (hi + dh < h) &
                        (wi + dw >= 0) & (wi + dw < w))
    return np.stack(rows).astype(np.float32)


@jax.jit
def tower_forward(x_nchw, w_stk_pt, b_stk, gamma_stk, beta_stk):
    """Run L stacked Blocks in ONE gridded pallas_call.

    x_nchw    : (N, C, H, W) f32
    w_stk_pt  : (L, Cout, Cin, K, K)  per-layer conv2 weights (PyTorch layout)
    b_stk     : (L, C)                per-layer conv2 biases (see note below)
    gamma_stk : (L, C)                per-layer BatchNorm2d weights
    beta_stk  : (L, C)                per-layer BatchNorm2d biases
    """
    del b_stk  # cancelled by training-mode BatchNorm; re-add for eval-mode BN
    N, C, H, W = x_nchw.shape
    L = w_stk_pt.shape[0]
    NHW = N * H * W

    # Boundary relayout, once per tower (amortized over L layers).  A full
    # network would keep this C-major slab as the persistent activation
    # layout and skip these transposes entirely.
    x2 = jnp.transpose(x_nchw, (1, 0, 2, 3)).reshape(C, NHW)
    # (L, Cout, Cin, kh, kw) -> (L, tap = kh*K+kw, Cout, Cin)
    wstk = jnp.transpose(w_stk_pt, (0, 3, 4, 1, 2)).reshape(L, K * K, C, C)
    gstk = gamma_stk.reshape(L, C, 1)
    bstk = beta_stk.reshape(L, C, 1)
    mask = jnp.asarray(_pad_masks(N, H, W))

    out2 = pl.pallas_call(
        functools.partial(_tower_kernel, w=W),
        out_shape=jax.ShapeDtypeStruct((C, NHW), jnp.float32),
        grid_spec=pltpu.PrefetchScalarGridSpec(
            num_scalar_prefetch=0,
            grid=(L,),
            in_specs=[
                pl.BlockSpec((K * K, NHW), lambda l: (0, 0)),              # masks (resident)
                pl.BlockSpec((C, NHW), lambda l: (0, 0)),                  # input slab (resident)
                pl.BlockSpec((None, K * K, C, C), lambda l: (l, 0, 0, 0)), # layer weights
                pl.BlockSpec((None, C, 1), lambda l: (l, 0, 0)),           # layer gamma
                pl.BlockSpec((None, C, 1), lambda l: (l, 0, 0)),           # layer beta
            ],
            out_specs=pl.BlockSpec((C, NHW), lambda l: (0, 0)),            # resident carrier
        ),
        compiler_params=pltpu.CompilerParams(
            dimension_semantics=("arbitrary",)),   # layers depend sequentially
    )(mask, x2, wstk, gstk, bstk)

    return jnp.transpose(out2.reshape(C, N, H, W), (1, 0, 2, 3))   # -> NCHW


def block_forward(x_nchw, w2_pt, b2, gamma, beta):
    """Single Block (exactly the PyTorch module's forward) = tower of length 1."""
    return tower_forward(x_nchw, w2_pt[None], b2[None], gamma[None], beta[None])


def ref_forward(x_nchw, w2_pt, b2, gamma, beta):
    """Pure-JAX reference mirroring the PyTorch forward (training-mode BN)."""
    xpad = jnp.pad(x_nchw, ((0, 0), (0, 0), (1, 1), (1, 1)))
    y = jax.lax.conv_general_dilated(
        xpad, w2_pt, window_strides=(1, 1), padding="VALID",
        dimension_numbers=("NCHW", "OIHW", "NCHW"),
    ) + b2[None, :, None, None]
    mean = jnp.mean(y, axis=(0, 2, 3), keepdims=True)
    var = jnp.mean((y - mean) ** 2, axis=(0, 2, 3), keepdims=True)
    yn = (y - mean) / jnp.sqrt(var + BN_EPS)
    yn = yn * gamma[None, :, None, None] + beta[None, :, None, None]
    out = yn + x_nchw
    return jnp.where(out >= 0, out, LEAKY_SLOPE * out)


if __name__ == "__main__":
    key = jax.random.PRNGKey(0)
    N, C, H, W = 2, 8, 8, 8           # small Go-board-like block, N*H*W = 128
    L = 4                             # layers fused into one pallas_call

    k_x, k_w, k_b, k_g, k_be = jax.random.split(key, 5)
    x = jax.random.normal(k_x, (N, C, H, W), jnp.float32)

    fan_in = C * K * K
    bound = 1.0 / (fan_in ** 0.5)
    # conv1 parameters exist in __init__ but its branch is dead in forward().
    w_stk = jax.random.uniform(k_w, (L, C, C, K, K), jnp.float32, -bound, bound)
    b_stk = jax.random.uniform(k_b, (L, C), jnp.float32, -bound, bound)
    gamma_stk = 1.0 + 0.1 * jax.random.normal(k_g, (L, C), jnp.float32)
    beta_stk = 0.1 * jax.random.normal(k_be, (L, C), jnp.float32)

    # 1) Single Block: exact module semantics.
    out1 = jax.block_until_ready(
        block_forward(x, w_stk[0], b_stk[0], gamma_stk[0], beta_stk[0]))
    ref1 = ref_forward(x, w_stk[0], b_stk[0], gamma_stk[0], beta_stk[0])
    err1 = float(jnp.max(jnp.abs(out1 - ref1)))
    assert out1.shape == (N, C, H, W) and err1 < 1e-4, f"block err = {err1}"

    # 2) Fused L-layer tower in one gridded pallas_call.
    outL = jax.block_until_ready(
        tower_forward(x, w_stk, b_stk, gamma_stk, beta_stk))
    refL = x
    for layer in range(L):
        refL = ref_forward(refL, w_stk[layer], b_stk[layer],
                           gamma_stk[layer], beta_stk[layer])
    errL = float(jnp.max(jnp.abs(outL - refL)))
    assert outL.shape == (N, C, H, W) and errL < 2e-4, f"tower err = {errL}"

    print("KERNEL_OK")
</pallas_src>

<mosaic_0001>
module attributes {stable_mosaic.version = 11 : i64} {
  func.func @_tower_kernel(%arg0: i32, %arg1: memref<9x128xf32, #tpu.memory_space<vmem>>, %arg2: memref<8x128xf32, #tpu.memory_space<vmem>>, %arg3: memref<1x9x8x8xf32, #tpu.memory_space<vmem>>, %arg4: memref<1x8x1xf32, #tpu.memory_space<vmem>>, %arg5: memref<1x8x1xf32, #tpu.memory_space<vmem>>, %arg6: memref<8x128xf32, #tpu.memory_space<vmem>>) attributes {dimension_semantics = [#tpu.dimension_semantics<arbitrary>], iteration_bounds = array<i64: 1>, scalar_prefetch = 0 : i64, scratch_operands = 0 : i64, tpu.core_type = #tpu.core_type<tc>, window_params = [{pipeline_mode = #tpu.pipeline_mode<synchronous>, transform_indices = @transform_0, window_bounds = array<i64: 9, 128>}, {pipeline_mode = #tpu.pipeline_mode<synchronous>, transform_indices = @transform_1, window_bounds = array<i64: 8, 128>}, {transform_indices = @transform_2, window_bounds = array<i64: 1, 9, 8, 8>}, {transform_indices = @transform_3, window_bounds = array<i64: 1, 8, 1>}, {transform_indices = @transform_4, window_bounds = array<i64: 1, 8, 1>}, {pipeline_mode = #tpu.pipeline_mode<synchronous>, transform_indices = @transform_5, window_bounds = array<i64: 8, 128>}]} {
    %c0_i32 = arith.constant 0 : i32
    %0 = arith.cmpi eq, %arg0, %c0_i32 : i32
    %1 = arith.extui %0 : i1 to i32
    %c0_i32_0 = arith.constant 0 : i32
    %2 = arith.cmpi ne, %1, %c0_i32_0 : i32
    scf.if %2 {
      %c0_56 = arith.constant 0 : index
      %c0_57 = arith.constant 0 : index
      %107 = vector.load %arg2[%c0_56, %c0_57] : memref<8x128xf32, #tpu.memory_space<vmem>>, vector<8x128xf32>
      %c0_58 = arith.constant 0 : index
      %c0_59 = arith.constant 0 : index
      %108 = vector.load %arg6[%c0_58, %c0_59] : memref<8x128xf32, #tpu.memory_space<vmem>>, vector<8x128xf32>
      tpu.vector_store %arg6[%c0_58, %c0_59], %107 {strides = array<i32>} : memref<8x128xf32, #tpu.memory_space<vmem>>, vector<8x128xf32>,
    } else {
    }
    %c0 = arith.constant 0 : index
    %c0_1 = arith.constant 0 : index
    %3 = vector.load %arg6[%c0, %c0_1] : memref<8x128xf32, #tpu.memory_space<vmem>>, vector<8x128xf32>
    %c0_2 = arith.constant 0 : index
    %c0_3 = arith.constant 0 : index
    %4 = vector.load %arg1[%c0_2, %c0_3] : memref<9x128xf32, #tpu.memory_space<vmem>>, vector<9x128xf32>
    %cst = arith.constant 0.000000e+00 : f32
    %5 = vector.broadcast %cst : f32 to vector<8x128xf32>
    %c9_i32 = arith.constant 9 : i32
    %6 = tpu.dynamic_rotate %3 by %c9_i32 dim 1 : vector<8x128xf32>, i32 -> vector<8x128xf32>
    %7 = vector.extract_strided_slice %4 {offsets = [0, 0], sizes = [1, 128], strides = [1, 1]} : vector<9x128xf32> to vector<1x128xf32>
    %8 = vector.broadcast %7 : vector<1x128xf32> to vector<8x128xf32>
    %9 = arith.mulf %6, %8 : vector<8x128xf32>
    %c0_4 = arith.constant 0 : index
    %c0_5 = arith.constant 0 : index
    %c0_6 = arith.constant 0 : index
    %c0_7 = arith.constant 0 : index
    %10 = vector.load %arg3[%c0_4, %c0_5, %c0_6, %c0_7] : memref<1x9x8x8xf32, #tpu.memory_space<vmem>>, vector<1x1x8x8xf32>
    %11 = vector.shape_cast %10 : vector<1x1x8x8xf32> to vector<8x8xf32>
    %cst_8 = arith.constant dense<0.000000e+00> : vector<8x128xf32>
    %12 = tpu.matmul %11, %9, %cst_8 {dimension_numbers = #tpu.dot_dimension_numbers<[1], [0], [0], [1], [0, 0, 1, 1], [], []>} : vector<8x8xf32>, vector<8x128xf32>, vector<8x128xf32> -> vector<8x128xf32>
    %13 = arith.addf %5, %12 : vector<8x128xf32>
    %c8_i32 = arith.constant 8 : i32
    %14 = tpu.dynamic_rotate %3 by %c8_i32 dim 1 : vector<8x128xf32>, i32 -> vector<8x128xf32>
    %15 = vector.extract_strided_slice %4 {offsets = [1, 0], sizes = [1, 128], strides = [1, 1]} : vector<9x128xf32> to vector<1x128xf32>
    %16 = vector.broadcast %15 : vector<1x128xf32> to vector<8x128xf32>
    %17 = arith.mulf %14, %16 : vector<8x128xf32>
    %c0_9 = arith.constant 0 : index
    %c1 = arith.constant 1 : index
    %c0_10 = arith.constant 0 : index
    %c0_11 = arith.constant 0 : index
    %18 = vector.load %arg3[%c0_9, %c1, %c0_10, %c0_11] : memref<1x9x8x8xf32, #tpu.memory_space<vmem>>, vector<1x1x8x8xf32>
    %19 = vector.shape_cast %18 : vector<1x1x8x8xf32> to vector<8x8xf32>
    %cst_12 = arith.constant dense<0.000000e+00> : vector<8x128xf32>
    %20 = tpu.matmul %19, %17, %cst_12 {dimension_numbers = #tpu.dot_dimension_numbers<[1], [0], [0], [1], [0, 0, 1, 1], [], []>} : vector<8x8xf32>, vector<8x128xf32>, vector<8x128xf32> -> vector<8x128xf32>
    %21 = arith.addf %13, %20 : vector<8x128xf32>
    %c7_i32 = arith.constant 7 : i32
    %22 = tpu.dynamic_rotate %3 by %c7_i32 dim 1 : vector<8x128xf32>, i32 -> vector<8x128xf32>
    %23 = vector.extract_strided_slice %4 {offsets = [2, 0], sizes = [1, 128], strides = [1, 1]} : vector<9x128xf32> to vector<1x128xf32>
    %24 = vector.broadcast %23 : vector<1x128xf32> to vector<8x128xf32>
    %25 = arith.mulf %22, %24 : vector<8x128xf32>
    %c0_13 = arith.constant 0 : index
    %c2 = arith.constant 2 : index
    %c0_14 = arith.constant 0 : index
    %c0_15 = arith.constant 0 : index
    %26 = vector.load %arg3[%c0_13, %c2, %c0_14, %c0_15] : memref<1x9x8x8xf32, #tpu.memory_space<vmem>>, vector<1x1x8x8xf32>
    %27 = vector.shape_cast %26 : vector<1x1x8x8xf32> to vector<8x8xf32>
    %cst_16 = arith.constant dense<0.000000e+00> : vector<8x128xf32>
    %28 = tpu.matmul %27, %25, %cst_16 {dimension_numbers = #tpu.dot_dimension_numbers<[1], [0], [0], [1], [0, 0, 1, 1], [], []>} : vector<8x8xf32>, vector<8x128xf32>, vector<8x128xf32> -> vector<8x128xf32>
    %29 = arith.addf %21, %28 : vector<8x128xf32>
    %c1_i32 = arith.constant 1 : i32
    %30 = tpu.dynamic_rotate %3 by %c1_i32 dim 1 : vector<8x128xf32>, i32 -> vector<8x128xf32>
    %31 = vector.extract_strided_slice %4 {offsets = [3, 0], sizes = [1, 128], strides = [1, 1]} : vector<9x128xf32> to vector<1x128xf32>
    %32 = vector.broadcast %31 : vector<1x128xf32> to vector<8x128xf32>
    %33 = arith.mulf %30, %32 : vector<8x128xf32>
    %c0_17 = arith.constant 0 : index
    %c3 = arith.constant 3 : index
    %c0_18 = arith.constant 0 : index
    %c0_19 = arith.constant 0 : index
    %34 = vector.load %arg3[%c0_17, %c3, %c0_18, %c0_19] : memref<1x9x8x8xf32, #tpu.memory_space<vmem>>, vector<1x1x8x8xf32>
    %35 = vector.shape_cast %34 : vector<1x1x8x8xf32> to vector<8x8xf32>
    %cst_20 = arith.constant dense<0.000000e+00> : vector<8x128xf32>
    %36 = tpu.matmul %35, %33, %cst_20 {dimension_numbers = #tpu.dot_dimension_numbers<[1], [0], [0], [1], [0, 0, 1, 1], [], []>} : vector<8x8xf32>, vector<8x128xf32>, vector<8x128xf32> -> vector<8x128xf32>
    %37 = arith.addf %29, %36 : vector<8x128xf32>
    %38 = vector.extract_strided_slice %4 {offsets = [4, 0], sizes = [1, 128], strides = [1, 1]} : vector<9x128xf32> to vector<1x128xf32>
    %39 = vector.broadcast %38 : vector<1x128xf32> to vector<8x128xf32>
    %40 = arith.mulf %3, %39 : vector<8x128xf32>
    %c0_21 = arith.constant 0 : index
    %c4 = arith.constant 4 : index
    %c0_22 = arith.constant 0 : index
    %c0_23 = arith.constant 0 : index
    %41 = vector.load %arg3[%c0_21, %c4, %c0_22, %c0_23] : memref<1x9x8x8xf32, #tpu.memory_space<vmem>>, vector<1x1x8x8xf32>
    %42 = vector.shape_cast %41 : vector<1x1x8x8xf32> to vector<8x8xf32>
    %cst_24 = arith.constant dense<0.000000e+00> : vector<8x128xf32>
    %43 = tpu.matmul %42, %40, %cst_24 {dimension_numbers = #tpu.dot_dimension_numbers<[1], [0], [0], [1], [0, 0, 1, 1], [], []>} : vector<8x8xf32>, vector<8x128xf32>, vector<8x128xf32> -> vector<8x128xf32>
    %44 = arith.addf %37, %43 : vector<8x128xf32>
    %c127_i32 = arith.constant 127 : i32
    %45 = tpu.dynamic_rotate %3 by %c127_i32 dim 1 : vector<8x128xf32>, i32 -> vector<8x128xf32>
    %46 = vector.extract_strided_slice %4 {offsets = [5, 0], sizes = [1, 128], strides = [1, 1]} : vector<9x128xf32> to vector<1x128xf32>
    %47 = vector.broadcast %46 : vector<1x128xf32> to vector<8x128xf32>
    %48 = arith.mulf %45, %47 : vector<8x128xf32>
    %c0_25 = arith.constant 0 : index
    %c5 = arith.constant 5 : index
    %c0_26 = arith.constant 0 : index
    %c0_27 = arith.constant 0 : index
    %49 = vector.load %arg3[%c0_25, %c5, %c0_26, %c0_27] : memref<1x9x8x8xf32, #tpu.memory_space<vmem>>, vector<1x1x8x8xf32>
    %50 = vector.shape_cast %49 : vector<1x1x8x8xf32> to vector<8x8xf32>
    %cst_28 = arith.constant dense<0.000000e+00> : vector<8x128xf32>
    %51 = tpu.matmul %50, %48, %cst_28 {dimension_numbers = #tpu.dot_dimension_numbers<[1], [0], [0], [1], [0, 0, 1, 1], [], []>} : vector<8x8xf32>, vector<8x128xf32>, vector<8x128xf32> -> vector<8x128xf32>
    %52 = arith.addf %44, %51 : vector<8x128xf32>
    %c121_i32 = arith.constant 121 : i32
    %53 = tpu.dynamic_rotate %3 by %c121_i32 dim 1 : vector<8x128xf32>, i32 -> vector<8x128xf32>
    %54 = vector.extract_strided_slice %4 {offsets = [6, 0], sizes = [1, 128], strides = [1, 1]} : vector<9x128xf32> to vector<1x128xf32>
    %55 = vector.broadcast %54 : vector<1x128xf32> to vector<8x128xf32>
    %56 = arith.mulf %53, %55 : vector<8x128xf32>
    %c0_29 = arith.constant 0 : index
    %c6 = arith.constant 6 : index
    %c0_30 = arith.constant 0 : index
    %c0_31 = arith.constant 0 : index
    %57 = vector.load %arg3[%c0_29, %c6, %c0_30, %c0_31] : memref<1x9x8x8xf32, #tpu.memory_space<vmem>>, vector<1x1x8x8xf32>
    %58 = vector.shape_cast %57 : vector<1x1x8x8xf32> to vector<8x8xf32>
    %cst_32 = arith.constant dense<0.000000e+00> : vector<8x128xf32>
    %59 = tpu.matmul %58, %56, %cst_32 {dimension_numbers = #tpu.dot_dimension_numbers<[1], [0], [0], [1], [0, 0, 1, 1], [], []>} : vector<8x8xf32>, vector<8x128xf32>, vector<8x128xf32> -> vector<8x128xf32>
    %60 = arith.addf %52, %59 : vector<8x128xf32>
    %c120_i32 = arith.constant 120 : i32
    %61 = tpu.dynamic_rotate %3 by %c120_i32 dim 1 : vector<8x128xf32>, i32 -> vector<8x128xf32>
    %62 = vector.extract_strided_slice %4 {offsets = [7, 0], sizes = [1, 128], strides = [1, 1]} : vector<9x128xf32> to vector<1x128xf32>
    %63 = vector.broadcast %62 : vector<1x128xf32> to vector<8x128xf32>
    %64 = arith.mulf %61, %63 : vector<8x128xf32>
    %c0_33 = arith.constant 0 : index
    %c7 = arith.constant 7 : index
    %c0_34 = arith.constant 0 : index
    %c0_35 = arith.constant 0 : index
    %65 = vector.load %arg3[%c0_33, %c7, %c0_34, %c0_35] : memref<1x9x8x8xf32, #tpu.memory_space<vmem>>, vector<1x1x8x8xf32>
    %66 = vector.shape_cast %65 : vector<1x1x8x8xf32> to vector<8x8xf32>
    %cst_36 = arith.constant dense<0.000000e+00> : vector<8x128xf32>
    %67 = tpu.matmul %66, %64, %cst_36 {dimension_numbers = #tpu.dot_dimension_numbers<[1], [0], [0], [1], [0, 0, 1, 1], [], []>} : vector<8x8xf32>, vector<8x128xf32>, vector<8x128xf32> -> vector<8x128xf32>
    %68 = arith.addf %60, %67 : vector<8x128xf32>
    %c119_i32 = arith.constant 119 : i32
    %69 = tpu.dynamic_rotate %3 by %c119_i32 dim 1 : vector<8x128xf32>, i32 -> vector<8x128xf32>
    %70 = vector.extract_strided_slice %4 {offsets = [8, 0], sizes = [1, 128], strides = [1, 1]} : vector<9x128xf32> to vector<1x128xf32>
    %71 = vector.broadcast %70 : vector<1x128xf32> to vector<8x128xf32>
    %72 = arith.mulf %69, %71 : vector<8x128xf32>
    %c0_37 = arith.constant 0 : index
    %c8 = arith.constant 8 : index
    %c0_38 = arith.constant 0 : index
    %c0_39 = arith.constant 0 : index
    %73 = vector.load %arg3[%c0_37, %c8, %c0_38, %c0_39] : memref<1x9x8x8xf32, #tpu.memory_space<vmem>>, vector<1x1x8x8xf32>
    %74 = vector.shape_cast %73 : vector<1x1x8x8xf32> to vector<8x8xf32>
    %cst_40 = arith.constant dense<0.000000e+00> : vector<8x128xf32>
    %75 = tpu.matmul %74, %72, %cst_40 {dimension_numbers = #tpu.dot_dimension_numbers<[1], [0], [0], [1], [0, 0, 1, 1], [], []>} : vector<8x8xf32>, vector<8x128xf32>, vector<8x128xf32> -> vector<8x128xf32>
    %76 = arith.addf %68, %75 : vector<8x128xf32>
    %cst_41 = arith.constant dense<0.000000e+00> : vector<8xf32>
    %77 = vector.multi_reduction <add>, %76, %cst_41 [1] : vector<8x128xf32> to vector<8xf32>
    %78 = vector.shape_cast %77 : vector<8xf32> to vector<8x1xf32>
    %cst_42 = arith.constant 7.812500e-03 : f32
    %79 = vector.broadcast %cst_42 : f32 to vector<8x1xf32>
    %80 = arith.mulf %78, %79 : vector<8x1xf32>
    %81 = vector.broadcast %80 : vector<8x1xf32> to vector<8x128xf32>
    %82 = arith.subf %76, %81 : vector<8x128xf32>
    %83 = arith.mulf %82, %82 : vector<8x128xf32>
    %cst_43 = arith.constant dense<0.000000e+00> : vector<8xf32>
    %84 = vector.multi_reduction <add>, %83, %cst_43 [1] : vector<8x128xf32> to vector<8xf32>
    %85 = vector.shape_cast %84 : vector<8xf32> to vector<8x1xf32>
    %cst_44 = arith.constant 7.812500e-03 : f32
    %86 = vector.broadcast %cst_44 : f32 to vector<8x1xf32>
    %87 = arith.mulf %85, %86 : vector<8x1xf32>
    %c0_45 = arith.constant 0 : index
    %c0_46 = arith.constant 0 : index
    %c0_47 = arith.constant 0 : index
    %88 = vector.load %arg4[%c0_45, %c0_46, %c0_47] : memref<1x8x1xf32, #tpu.memory_space<vmem>>, vector<1x8x1xf32>
    %89 = vector.shape_cast %88 : vector<1x8x1xf32> to vector<8x1xf32>
    %cst_48 = arith.constant 9.99999974E-6 : f32
    %90 = vector.broadcast %cst_48 : f32 to vector<8x1xf32>
    %91 = arith.addf %87, %90 : vector<8x1xf32>
    %92 = math.rsqrt %91 : vector<8x1xf32>
    %93 = arith.mulf %89, %92 : vector<8x1xf32>
    %94 = vector.broadcast %93 : vector<8x1xf32> to vector<8x128xf32>
    %95 = arith.mulf %82, %94 : vector<8x128xf32>
    %c0_49 = arith.constant 0 : index
    %c0_50 = arith.constant 0 : index
    %c0_51 = arith.constant 0 : index
    %96 = vector.load %arg5[%c0_49, %c0_50, %c0_51] : memref<1x8x1xf32, #tpu.memory_space<vmem>>, vector<1x8x1xf32>
    %97 = vector.shape_cast %96 : vector<1x8x1xf32> to vector<8x1xf32>
    %98 = vector.broadcast %97 : vector<8x1xf32> to vector<8x128xf32>
    %99 = arith.addf %95, %98 : vector<8x128xf32>
    %100 = arith.addf %99, %3 : vector<8x128xf32>
    %cst_52 = arith.constant 0.000000e+00 : f32
    %101 = vector.broadcast %cst_52 : f32 to vector<8x128xf32>
    %102 = arith.cmpf oge, %100, %101 : vector<8x128xf32>
    %cst_53 = arith.constant 0.00999999977 : f32
    %103 = vector.broadcast %cst_53 : f32 to vector<8x128xf32>
    %104 = arith.mulf %103, %100 : vector<8x128xf32>
    %105 = arith.select %102, %100, %104 : vector<8x128xi1>, vector<8x128xf32>
    %c0_54 = arith.constant 0 : index
    %c0_55 = arith.constant 0 : index
    %106 = vector.load %arg6[%c0_54, %c0_55] : memref<8x128xf32, #tpu.memory_space<vmem>>, vector<8x128xf32>
    tpu.vector_store %arg6[%c0_54, %c0_55], %105 {strides = array<i32>} : memref<8x128xf32, #tpu.memory_space<vmem>>, vector<8x128xf32>,
    return
  }
  func.func @transform_0(%arg0: i32) -> (i32, i32) {
    %c0_i32 = arith.constant 0 : i32
    %c0_i32_0 = arith.constant 0 : i32
    %c0_i32_1 = arith.constant 0 : i32
    return %c0_i32, %c0_i32_0 : i32, i32
  }
  func.func @transform_1(%arg0: i32) -> (i32, i32) {
    %c0_i32 = arith.constant 0 : i32
    %c0_i32_0 = arith.constant 0 : i32
    %c0_i32_1 = arith.constant 0 : i32
    return %c0_i32, %c0_i32_0 : i32, i32
  }
  func.func @transform_2(%arg0: i32) -> (i32, i32, i32, i32) {
    %c0_i32 = arith.constant 0 : i32
    %c0_i32_0 = arith.constant 0 : i32
    %c0_i32_1 = arith.constant 0 : i32
    %c0_i32_2 = arith.constant 0 : i32
    return %arg0, %c0_i32, %c0_i32_0, %c0_i32_1 : i32, i32, i32, i32
  }
  func.func @transform_3(%arg0: i32) -> (i32, i32, i32) {
    %c0_i32 = arith.constant 0 : i32
    %c0_i32_0 = arith.constant 0 : i32
    %c0_i32_1 = arith.constant 0 : i32
    return %arg0, %c0_i32, %c0_i32_0 : i32, i32, i32
  }
  func.func @transform_4(%arg0: i32) -> (i32, i32, i32) {
    %c0_i32 = arith.constant 0 : i32
    %c0_i32_0 = arith.constant 0 : i32
    %c0_i32_1 = arith.constant 0 : i32
    return %arg0, %c0_i32, %c0_i32_0 : i32, i32, i32
  }
  func.func @transform_5(%arg0: i32) -> (i32, i32) {
    %c0_i32 = arith.constant 0 : i32
    %c0_i32_0 = arith.constant 0 : i32
    %c0_i32_1 = arith.constant 0 : i32
    return %c0_i32, %c0_i32_0 : i32, i32
  }
}

</mosaic_0001>

<bundles_post_ra>
// kernel: tower_forward.1
= control target key start
LH: loop header
LB: loop body
LE: loop exit
PB: predicated region body
PF: predicated region fallthrough
CT: control target
= control target key end

     0   :  { %v902_v1 = vmov 0.0   ;;  %vm903_vm0 = vmmov 0   ;;  %s904_s20 = smov 8   ;;  %s905_s21 = smov 7   ;;  %v31_v2 = vlaneseq  ;;  %vm46_vm1 = vcmask 64512   ;;  %s1036_s1 = inlined_call_operand.vmem [shape: f32[8,128], index: 1, kind: input, shape index: {}]   ;;  %s1037_s0 = inlined_call_operand.vmem [shape: f32[9,128], index: 0, kind: input, shape index: {}]   ;;  %s1038_s2 = inlined_call_operand.vmem [shape: f32[1,9,8,8], index: 2, kind: input, shape index: {}]   ;;  %s1039_s4 = inlined_call_operand.vmem [shape: f32[1,8,1], index: 4, kind: input, shape index: {}]   ;;  %s1040_s3 = inlined_call_operand.vmem [shape: f32[1,8,1], index: 3, kind: input, shape index: {}]   ;;  %s1041_s5 = inlined_call_operand.vmem [shape: f32[8,128], index: 5, kind: output, shape index: {}]  }
   0x1   :  { %v946_v0 = vld [vmem:[%s1036_s1] sm:$0xff]  ;;  %842 = vmatprep.subr.mxu0 %v902_v1  ;;  %844 = vmatprep.mubr.msk.f32.mxu0 %vm903_vm0, %v902_v1  ;;  %s906_s1 = smov 9   ;;  %s907_s22 = smov 1   ;;  %v806_v18 = vld [vmem:[%s1038_s2 + $0x8] sm:$0xff]  ;;  %v809_v29 = vld [vmem:[%s1038_s2 + $0x10] sm:$0xff] }
   0x2   :  { %37 = vrot.lane.b32.xlu0 %v946_v0, %s904_s20  ;;  %193 = vrot.lane.b32.xlu1 %v946_v0, %s905_s21  ;;  %s908_s23 = smov 127   ;;  %s909_s24 = smov 121   ;;  %v32_v3 = vshrl.u32 %v31_v2, 7  ;;  %v27_v6 = vld [vmem:[%s1037_s0] sm:$0xff]  ;;  %v811_v35 = vld [vmem:[%s1038_s2 + $0x18] sm:$0xff] }
   0x3   :  { %847 = vmatprep.subr.mxu1 %v902_v1  ;;  %849 = vmatprep.mubr.msk.f32.mxu1 %vm903_vm0, %v902_v1  ;;  %s910_s25 = smov 120   ;;  %s911_s26 = smov 119   ;;  %v36_v26 = vld [vmem:[%s1038_s2] sm:$0xff]  ;;  %v821_v39 = vld [vmem:[%s1037_s0 + $0x8] ss:$0 sm:$0xff]  ;;  %v817_v45 = vld [vmem:[%s1038_s2 + $0x30] sm:$0xff] }
   0x4   :  { %v41_v4 = vsub.s32 1, %v32_v3  ;;  %v197_v5 = vsub.s32 2, %v32_v3  ;;  %v33_v9 = vsub.s32 0, %v32_v3  ;;  %v280_v10 = vsub.s32 3, %v32_v3  ;;  %v813_v38 = vld [vmem:[%s1038_s2 + $0x20] sm:$0xff]  ;;  %v815_v43 = vld [vmem:[%s1038_s2 + $0x28] sm:$0xff] }
   0x5   :  { %v361_v11 = vsub.s32 4, %v32_v3  ;;  %v444_v14 = vsub.s32 5, %v32_v3  ;;  %v527_v21 = vsub.s32 6, %v32_v3  ;;  %v610_v28 = vsub.s32 7, %v32_v3  ;;  %v819_v46 = vld [vmem:[%s1038_s2 + $0x38] sm:$0xff]  ;;  %v822_v47 = vld [vmem:[%s1038_s2 + $0x40] sm:$0xff] }
   0x6   :  { %29 = vrot.lane.b32.xlu0 %v946_v0, %s906_s1  ;;  %276 = vrot.lane.b32.xlu1 %v946_v0, %s907_s22  ;;  %v42_v7 = vrot.slane %v27_v6, %v41_v4  ;;  %v198_v8 = vrot.slane %v27_v6, %v197_v5  ;;  %v34_v17 = vrot.slane %v27_v6, %v33_v9 }
   0x7   :  { %v281_v19 = vrot.slane %v27_v6, %v280_v10  ;;  %v362_v20 = vrot.slane %v27_v6, %v361_v11  ;;  %v445_v27 = vrot.slane %v27_v6, %v444_v14  ;;  %v528_v31 = vrot.slane %v27_v6, %v527_v21 }
   0x8   :  { %v611_v36 = vrot.slane %v27_v6, %v610_v28 }
   0x9   :  { %v363_v30 = vmul.f32 %v362_v20, %v946_v0  ;;  %v780_v20 = vld [vmem:[%s1040_s3] sm:$0xff] }
   0xa   :  { %440 = vrot.lane.b32.xlu0 %v946_v0, %s908_s23  ;;  %523 = vrot.lane.b32.xlu1 %v946_v0, %s909_s24 }
   0xe   :  { %606 = vrot.lane.b32.xlu0 %v946_v0, %s910_s25  ;;  %689 = vrot.lane.b32.xlu1 %v946_v0, %s911_s26 }
  0x74   :  { %v38_v12 = vpop.permute.xlu0 %37  ;;  %v194_v13 = vpop.permute.xlu1 %193 }
  0x75   :  { %v43_v15 = vmul.f32 %v42_v7, %v38_v12  ;;  %v199_v16 = vmul.f32 %v198_v8, %v194_v13 }
  0x77   :  { %843 = vmatpush3.msra.mxu0 %v43_v15  ;;  %v912_v15 = vmov 0  }
  0x78   :  { %v30_v22 = vpop.permute.xlu0 %29  ;;  %852 = vmatprep.subr.mxu0 %v902_v1  ;;  %845 = vmatmul.mubr.msk.f32.vlgmr.msra.gmra.mxu0 %vm46_vm1, %v806_v18  ;;  %v277_v23 = vpop.permute.xlu1 %276 }
  0x79   :  { %v35_v24 = vmul.f32 %v34_v17, %v30_v22  ;;  %853 = vmatpush3.msra.mxu0 %v199_v16  ;;  %v282_v25 = vmul.f32 %v281_v19, %v277_v23  ;;  %854 = vmatprep.mubr.msk.f32.mxu0 %vm903_vm0, %v902_v1  ;;  %v790_v16 = vld [vmem:[%s1039_s4] sm:$0xff] }
  0x7a   :  { %862 = vmatprep.subr.mxu0 %v902_v1  ;;  %898 = vset.pattern.permute.xlu0 %v912_v15 }
  0x7b   :  { %848 = vmatpush3.msra.mxu1 %v35_v24  ;;  %899 = vset.pattern.permute.xlu1 %v912_v15 }
  0x7c   :  { %850 = vmatmul.mubr.msk.f32.vlgmr.msra.gmra.mxu1 %vm46_vm1, %v36_v26  ;;  %857 = vmatprep.subr.mxu1 %v902_v1  ;;  %v441_v32 = vpop.permute.xlu0 %440  ;;  %v524_v33 = vpop.permute.xlu1 %523 }
  0x7d   :  { %855 = vmatmul.mubr.msk.f32.vlgmr.msra.gmra.mxu0 %vm46_vm1, %v809_v29  ;;  %858 = vmatpush3.msra.mxu1 %v282_v25  ;;  %v446_v34 = vmul.f32 %v445_v27, %v441_v32  ;;  %v529_v37 = vmul.f32 %v528_v31, %v524_v33 }
  0x7e   :  { %859 = vmatprep.mubr.msk.f32.mxu1 %vm903_vm0, %v902_v1  ;;  %863 = vmatpush3.msra.mxu0 %v363_v30 }
  0x7f   :  { %864 = vmatprep.mubr.msk.f32.mxu0 %vm903_vm0, %v902_v1  ;;  %867 = vmatprep.subr.mxu1 %v902_v1 }
  0x80   :  { %860 = vmatmul.mubr.msk.f32.vlgmr.msra.gmra.mxu1 %vm46_vm1, %v811_v35  ;;  %v607_v40 = vpop.permute.xlu0 %606  ;;  %872 = vmatprep.subr.mxu0 %v902_v1  ;;  %v690_v41 = vpop.permute.xlu1 %689 }
  0x81   :  { %865 = vmatmul.mubr.msk.f32.vlgmr.msra.gmra.mxu0 %vm46_vm1, %v813_v38  ;;  %868 = vmatpush3.msra.mxu1 %v446_v34  ;;  %v612_v42 = vmul.f32 %v611_v36, %v607_v40  ;;  %v695_v44 = vmul.f32 %v821_v39, %v690_v41 }
  0x82   :  { %869 = vmatprep.mubr.msk.f32.mxu1 %vm903_vm0, %v902_v1  ;;  %873 = vmatpush3.msra.mxu0 %v529_v37 }
  0x83   :  { %874 = vmatprep.mubr.msk.f32.mxu0 %vm903_vm0, %v902_v1  ;;  %877 = vmatprep.subr.mxu1 %v902_v1 }
  0x84   :  { %870 = vmatmul.mubr.msk.f32.vlgmr.msra.gmra.mxu1 %vm46_vm1, %v815_v43  ;;  %882 = vmatprep.subr.mxu0 %v902_v1 }
  0x85   :  { %875 = vmatmul.mubr.msk.f32.vlgmr.msra.gmra.mxu0 %vm46_vm1, %v817_v45  ;;  %878 = vmatpush3.msra.mxu1 %v612_v42 }
  0x86   :  { %879 = vmatprep.mubr.msk.f32.mxu1 %vm903_vm0, %v902_v1  ;;  %883 = vmatpush3.msra.mxu0 %v695_v44 }
  0x87   :  { %884 = vmatprep.mubr.msk.f32.mxu0 %vm903_vm0, %v902_v1 }
  0x88   :  { %880 = vmatmul.mubr.msk.f32.vlgmr.msra.gmra.mxu1 %vm46_vm1, %v819_v46 }
  0x89   :  { %885 = vmatmul.mubr.msk.f32.vlgmr.msra.gmra.mxu0 %vm46_vm1, %v822_v47 }
 0x138   :  { %v116_v48 = vpop.f32.mrf.mxu0 }
 0x13a   :  { %v846_v49 = vpop.f32.mrf.mxu0 }
 0x13c   :  { %v189_v50 = vpop.f32.mrf.mxu1 }
 0x13d   :  { %v190_v51 = vadd.f32 %v189_v50, %v116_v48  ;;  %v271_v52 = vpop.f32.mrf.mxu0 }
 0x13e   :  { %v851_v53 = vpop.f32.mrf.mxu1 }
 0x13f   :  { %v275_v54 = vadd.f32 %v271_v52, %v190_v51  ;;  %v856_v55 = vpop.f32.mrf.mxu0 }
 0x140   :  { %v354_v56 = vpop.f32.mrf.mxu1 }
 0x141   :  { %v358_v57 = vadd.f32 %v354_v56, %v275_v54  ;;  %v435_v58 = vpop.f32.mrf.mxu0 }
 0x142   :  { %v861_v59 = vpop.f32.mrf.mxu1 }
 0x143   :  { %v439_v60 = vadd.f32 %v435_v58, %v358_v57  ;;  %v866_v61 = vpop.f32.mrf.mxu0 }
 0x144   :  { %v518_v62 = vpop.f32.mrf.mxu1 }
 0x145   :  { %v522_v63 = vadd.f32 %v518_v62, %v439_v60  ;;  %v601_v1 = vpop.f32.mrf.mxu0 }
 0x146   :  { %v871_v2 = vpop.f32.mrf.mxu1 }
 0x147   :  { %v605_v3 = vadd.f32 %v601_v1, %v522_v63  ;;  %v876_v4 = vpop.f32.mrf.mxu0 }
 0x148   :  { %v684_v5 = vpop.f32.mrf.mxu1 }
 0x149   :  { %v688_v6 = vadd.f32 %v684_v5, %v605_v3  ;;  %v767_v7 = vpop.f32.mrf.mxu0 }
 0x14a   :  { %v881_v8 = vpop.f32.mrf.mxu1 }
 0x14b   :  { %v771_v9 = vadd.f32 %v767_v7, %v688_v6  ;;  %v886_v10 = vpop.f32.mrf.mxu0 }
 0x14d   :  { %772 = vadd.xlane.f32.xlu0 %v771_v9 }
 0x1d6   :  { %v773_v11 = vpop.xlane.xlu0 %772 }
 0x1d7   :  { %v774_v12 = vmul.f32 0.0078125, %v773_v11 }
 0x1d9   :  { %v775_v13 = vsub.f32 %v771_v9, %v774_v12 }
 0x1db   :  { %v776_v14 = vmul.f32 %v775_v13, %v775_v13 }
 0x1dd   :  { %777 = vadd.xlane.f32.xlu1 %v776_v14 }
 0x1ee   :  { %793 = vperm.xlu1 %899, %v790_v16  }
 0x266   :  { %v778_v17 = vpop.xlane.xlu1 %777 }
 0x267   :  { %v779_v18 = vmul.f32 0.0078125, %v778_v17 }
 0x269   :  { %v781_v19 = vadd.f32 1e-05, %v779_v18 }
 0x26a   :  { %v794_v24 = vpop.permute.xlu1 %793 }
 0x26b   :  { %900 = vrsqrt.f32 %v781_v19 }
 0x278   :  { %v901_v21 = vpop.eup %900 }
 0x279   :  { %v783_v22 = vmul.f32 %v901_v21, %v780_v20 }
 0x27b   :  { %786 = vperm.xlu0 %898, %v783_v22  }
 0x2f6   :  { %v787_v23 = vpop.permute.xlu0 %786 }
 0x2f7   :  { %v789_v25 = vmul.f32 %v787_v23, %v775_v13 }
 0x2f9   :  { %v796_v26 = vadd.f32 %v794_v24, %v789_v25 }
 0x2fb   :  { %v797_v27 = vadd.f32 %v796_v26, %v946_v0 }
 0x2fd   :  { %vm798_vm2 = vcmp.ge.f32.partialorder %v797_v27, 0.0  ;;  %v799_v28 = vmul.f32 0.01, %v797_v27 }
 0x2ff   :  { %v800_v29 = vsel %vm798_vm2, %v797_v27, %v799_v28 }
 0x300   :  { %801 = vst [vmem:[%s1041_s5] sm:$0xff] %v800_v29 }

</bundles_post_ra>
